<compile_context>
chip_gen: v5e
topology: v5e:2x2
jax: 0.10.0
libtpu: 0.0.40
codegen_flags: <defaults>
</compile_context>

<pallas_src>
import functools

import jax
import jax.numpy as jnp
from jax.experimental import pallas as pl
from jax.experimental.pallas import tpu as pltpu

LANE = 128


def _round_up(n, m):
    return ((n + m - 1) // m) * m


def _lane_pad(d):
    # v6e/v7x MXU is 2x256x256: pad real dims >=192 to 256 for full array width;
    # tiny dims stay at 128 (avoids quadrupling wasted MACs; exact fill on v5e).
    return _round_up(d, 256) if d >= 192 else _round_up(d, LANE)


def _apply_activation(y, act):
    if act is None:
        return y
    if act == "relu":
        return jnp.maximum(y, 0.0)
    if act == "tanh":
        return jnp.tanh(y)
    if act == "sigmoid":
        return jax.nn.sigmoid(y)
    raise ValueError(f"unsupported activation: {act}")


def _ffnet_kernel(*refs, activations, io_dtype):
    """Fused forward pass. refs = (x, w0, b0, w1, b1, ..., out).

    x:   (TM, D0_pad) io_dtype (bf16)
    w_l: (Din_pad, Dout_pad) io_dtype, b_l: (1, Dout_pad) f32
    out: (TM, Dlast_pad) out dtype
    """
    x_ref, o_ref = refs[0], refs[-1]
    wb_refs = refs[1:-1]
    n_layers = len(activations)

    h = x_ref[...]
    for l in range(n_layers):
        w = wb_refs[2 * l][...]
        b = wb_refs[2 * l + 1][...]
        # MXU matmul with f32 accumulation; bias + activation stay in f32
        # (v5e has no bf16 VPU/EUP); cast to bf16 only at the next MXU input.
        y = jnp.dot(h, w, preferred_element_type=jnp.float32) + b
        y = _apply_activation(y, activations[l])
        if l < n_layers - 1:
            h = y.astype(io_dtype)
        else:
            o_ref[...] = y.astype(o_ref.dtype)


def init_ffnet_params(key, in_dim, out_dim, hidden_layers, io_dtype=jnp.bfloat16):
    """PyTorch-style init; weights stored transposed (fan_in, fan_out), zero-padded
    to lane multiples, bf16. Biases stay f32. Returns (params, dims)."""
    dims = [in_dim] + [h[0] for h in hidden_layers] + [out_dim]
    acts = [h[1] for h in hidden_layers] + [None]
    padded = [_lane_pad(d) for d in dims]
    params = []
    for i, act in enumerate(acts):
        fan_in, fan_out = dims[i], dims[i + 1]
        key, kw, kb = jax.random.split(key, 3)
        bound = 1.0 / (fan_in ** 0.5)
        w_t = jax.random.uniform(kw, (fan_in, fan_out), jnp.float32,
                                 minval=-bound, maxval=bound)
        b = jax.random.uniform(kb, (fan_out,), jnp.float32,
                               minval=-bound, maxval=bound)
        w_pad = jnp.zeros((padded[i], padded[i + 1]), io_dtype)
        w_pad = w_pad.at[:fan_in, :fan_out].set(w_t.astype(io_dtype))
        b_pad = jnp.zeros((1, padded[i + 1]), jnp.float32)
        b_pad = b_pad.at[0, :fan_out].set(b)
        params.append((w_pad, b_pad, act))
    return params, dims


@functools.partial(
    jax.jit,
    static_argnames=("activations", "out_dim", "block_m", "io_dtype",
                     "out_dtype", "single_buffer_weights"))
def _ffnet_forward_jit(x, weights, biases, *, activations, out_dim, block_m,
                       io_dtype, out_dtype, single_buffer_weights):
    """One fused dispatch: pad/cast -> single pallas_call -> slice."""
    B, in_dim = x.shape
    d0_pad = weights[0].shape[0]
    dl_pad = weights[-1].shape[1]
    itemsize_io = jnp.dtype(io_dtype).itemsize
    itemsize_out = jnp.dtype(out_dtype).itemsize

    # Batch tile: multiple of the packed sublane count (16 for bf16).  Force
    # >= 2 tiles for B > 16 so the "parallel" batch axis can shard across
    # v7x's 2 TensorCores; pick tm to minimize zero-padding waste.
    sublane_io = 8 * 4 // itemsize_io           # 8 f32 / 16 bf16 rows per vreg
    n_tiles = max(pl.cdiv(B, block_m), 1)
    if B > sublane_io:
        n_tiles = max(n_tiles, 2)
    tm = _round_up(pl.cdiv(B, n_tiles), sublane_io)
    b_pad = tm * n_tiles
    grid = (n_tiles,)

    # Single-op pad+cast (fuses under jit; padded rows/cols are zero).
    x_p = jnp.pad(x.astype(io_dtype), ((0, b_pad - B), (0, d0_pad - in_dim)))

    # Weights/biases: constant index_map -> resident in VMEM across grid steps;
    # single-buffered (they never change) when supported.
    wb_kwargs = {"pipeline_mode": pl.Buffered(1)} if single_buffer_weights else {}
    const_map = lambda i: (0, 0)

    in_specs = [pl.BlockSpec((tm, d0_pad), lambda i: (i, 0))]
    flat_inputs = [x_p]
    for w, b in zip(weights, biases):
        in_specs.append(pl.BlockSpec(w.shape, const_map, **wb_kwargs))
        in_specs.append(pl.BlockSpec(b.shape, const_map, **wb_kwargs))
        flat_inputs.extend([w, b])
    out_specs = pl.BlockSpec((tm, dl_pad), lambda i: (i, 0))

    # Advisory cost hints for XLA's scheduler.
    flops = 0
    transcendentals = 0
    for w, act in zip(weights, activations):
        flops += 2 * b_pad * w.shape[0] * w.shape[1]
        if act in ("tanh", "sigmoid"):
            transcendentals += b_pad * w.shape[1]
    bytes_accessed = sum(int(a.size) * jnp.dtype(a.dtype).itemsize
                         for a in flat_inputs)
    bytes_accessed += b_pad * dl_pad * itemsize_out

    # VMEM budget from the real footprint, capped against the chip's capacity.
    weight_bytes = sum(int(w.size) * itemsize_io + int(b.size) * 4
                       for w, b in zip(weights, biases))
    if not single_buffer_weights:
        weight_bytes *= 2                       # default double-buffering
    tile_bytes = 2 * tm * d0_pad * itemsize_io + 2 * tm * dl_pad * itemsize_out
    inter_bytes = sum(tm * w.shape[1] * 4 for w in weights)  # f32 intermediates
    footprint = weight_bytes + tile_bytes + inter_bytes
    try:
        vmem_cap = int(pltpu.get_tpu_info().vmem_capacity_bytes)
    except Exception:
        vmem_cap = 64 * 1024 * 1024             # conservative (v7x per-TC) floor
    vmem_limit = int(min(0.75 * vmem_cap, max(4 * 1024 * 1024, 2 * footprint)))

    kernel = functools.partial(_ffnet_kernel, activations=activations,
                               io_dtype=io_dtype)
    out_p = pl.pallas_call(
        kernel,
        out_shape=jax.ShapeDtypeStruct((b_pad, dl_pad), out_dtype),
        grid=grid,
        in_specs=in_specs,
        out_specs=out_specs,
        compiler_params=pltpu.CompilerParams(
            dimension_semantics=("parallel",),  # 2 TCs on v7x; no-op v5e/v6e
            vmem_limit_bytes=vmem_limit),
        cost_estimate=pl.CostEstimate(
            flops=flops, transcendentals=transcendentals,
            bytes_accessed=bytes_accessed),
    )(*flat_inputs)

    # Padded batch rows / feature lanes are sliced off here (see invariants).
    return out_p[:B, :out_dim]


def ffnet_forward(x, params, dims, *, block_m=512, io_dtype=jnp.bfloat16,
                  out_dtype=jnp.float32):
    """Fused FFNet forward returning (B, out_dim). Set out_dtype=bf16 if the
    consumer tolerates it (halves writeback bytes; kept f32 for bit-match)."""
    weights = tuple(w for w, _, _ in params)
    biases = tuple(b for _, b, _ in params)
    acts = tuple(a for _, _, a in params)
    common = dict(activations=acts, out_dim=dims[-1], block_m=block_m,
                  io_dtype=io_dtype, out_dtype=out_dtype)
    try:
        return _ffnet_forward_jit(x, weights, biases,
                                  single_buffer_weights=True, **common)
    except Exception:
        # pl.Buffered(1) single-buffering not supported on this jax version:
        # fall back to default double-buffered resident weight specs.
        return _ffnet_forward_jit(x, weights, biases,
                                  single_buffer_weights=False, **common)


def ffnet_reference(x, params, dims, io_dtype=jnp.bfloat16):
    """Pure-JAX reference mirroring the kernel's precision (bf16 inputs, f32
    accum) on the UNPADDED weight/bias slices — also validates the padding."""
    n = len(params)
    h = x.astype(io_dtype)
    for i, (w_pad, b_pad, act) in enumerate(params):
        fan_in, fan_out = dims[i], dims[i + 1]
        w = w_pad[:fan_in, :fan_out]
        b = b_pad[0, :fan_out]
        y = jnp.dot(h, w, preferred_element_type=jnp.float32) + b
        y = _apply_activation(y, act)
        h = y.astype(io_dtype) if i < n - 1 else y
    return h


if __name__ == "__main__":
    key = jax.random.PRNGKey(0)

    # FFNet(in_dim=32, out_dim=16, hidden_layers=[(64, 'relu'), (32, 'tanh')])
    in_dim, out_dim = 32, 16
    hidden_layers = [(64, "relu"), (32, "tanh")]
    batch = 8

    kx, kp = jax.random.split(key)
    x = jax.random.normal(kx, (batch, in_dim), dtype=jnp.float32)
    params, dims = init_ffnet_params(kp, in_dim, out_dim, hidden_layers)

    out = ffnet_forward(x, params, dims)
    out = jax.block_until_ready(out)

    ref = ffnet_reference(x, params, dims)
    assert out.shape == (batch, out_dim), out.shape
    assert jnp.allclose(out, ref, atol=1e-3, rtol=1e-3), "mismatch vs reference"

    print("KERNEL_OK")
</pallas_src>

<mosaic_0001>
module attributes {stable_mosaic.version = 11 : i64} {
  func.func @_ffnet_kernel(%arg0: i32, %arg1: memref<16x128xbf16, #tpu.memory_space<vmem>>, %arg2: memref<128x128xbf16, #tpu.memory_space<vmem>>, %arg3: memref<1x128xf32, #tpu.memory_space<vmem>>, %arg4: memref<128x128xbf16, #tpu.memory_space<vmem>>, %arg5: memref<1x128xf32, #tpu.memory_space<vmem>>, %arg6: memref<128x128xbf16, #tpu.memory_space<vmem>>, %arg7: memref<1x128xf32, #tpu.memory_space<vmem>>, %arg8: memref<16x128xf32, #tpu.memory_space<vmem>>) attributes {dimension_semantics = [#tpu.dimension_semantics<parallel>], iteration_bounds = array<i64: 1>, scalar_prefetch = 0 : i64, scratch_operands = 0 : i64, tpu.core_type = #tpu.core_type<tc>, window_params = [{transform_indices = @transform_0, window_bounds = array<i64: 16, 128>}, {pipeline_mode = #tpu.pipeline_mode<synchronous>, transform_indices = @transform_1, window_bounds = array<i64: 128, 128>}, {pipeline_mode = #tpu.pipeline_mode<synchronous>, transform_indices = @transform_2, window_bounds = array<i64: 1, 128>}, {pipeline_mode = #tpu.pipeline_mode<synchronous>, transform_indices = @transform_3, window_bounds = array<i64: 128, 128>}, {pipeline_mode = #tpu.pipeline_mode<synchronous>, transform_indices = @transform_4, window_bounds = array<i64: 1, 128>}, {pipeline_mode = #tpu.pipeline_mode<synchronous>, transform_indices = @transform_5, window_bounds = array<i64: 128, 128>}, {pipeline_mode = #tpu.pipeline_mode<synchronous>, transform_indices = @transform_6, window_bounds = array<i64: 1, 128>}, {transform_indices = @transform_7, window_bounds = array<i64: 16, 128>}]} {
    %c0 = arith.constant 0 : index
    %c0_0 = arith.constant 0 : index
    %0 = vector.load %arg1[%c0, %c0_0] : memref<16x128xbf16, #tpu.memory_space<vmem>>, vector<16x128xbf16>
    %c0_1 = arith.constant 0 : index
    %c0_2 = arith.constant 0 : index
    %1 = vector.load %arg2[%c0_1, %c0_2] : memref<128x128xbf16, #tpu.memory_space<vmem>>, vector<128x128xbf16>
    %c0_3 = arith.constant 0 : index
    %c0_4 = arith.constant 0 : index
    %2 = vector.load %arg3[%c0_3, %c0_4] : memref<1x128xf32, #tpu.memory_space<vmem>>, vector<1x128xf32>
    %cst = arith.constant dense<0.000000e+00> : vector<16x128xf32>
    %3 = tpu.matmul %0, %1, %cst {dimension_numbers = #tpu.dot_dimension_numbers<[1], [0], [0], [1], [0, 0, 1, 1], [], []>} : vector<16x128xbf16>, vector<128x128xbf16>, vector<16x128xf32> -> vector<16x128xf32>
    %4 = vector.broadcast %2 : vector<1x128xf32> to vector<16x128xf32>
    %5 = arith.addf %3, %4 : vector<16x128xf32>
    %cst_5 = arith.constant 0.000000e+00 : f32
    %6 = vector.broadcast %cst_5 : f32 to vector<16x128xf32>
    %7 = arith.maximumf %5, %6 : vector<16x128xf32>
    %8 = arith.truncf %7 : vector<16x128xf32> to vector<16x128xbf16>
    %c0_6 = arith.constant 0 : index
    %c0_7 = arith.constant 0 : index
    %9 = vector.load %arg4[%c0_6, %c0_7] : memref<128x128xbf16, #tpu.memory_space<vmem>>, vector<128x128xbf16>
    %c0_8 = arith.constant 0 : index
    %c0_9 = arith.constant 0 : index
    %10 = vector.load %arg5[%c0_8, %c0_9] : memref<1x128xf32, #tpu.memory_space<vmem>>, vector<1x128xf32>
    %cst_10 = arith.constant dense<0.000000e+00> : vector<16x128xf32>
    %11 = tpu.matmul %8, %9, %cst_10 {dimension_numbers = #tpu.dot_dimension_numbers<[1], [0], [0], [1], [0, 0, 1, 1], [], []>} : vector<16x128xbf16>, vector<128x128xbf16>, vector<16x128xf32> -> vector<16x128xf32>
    %12 = vector.broadcast %10 : vector<1x128xf32> to vector<16x128xf32>
    %13 = arith.addf %11, %12 : vector<16x128xf32>
    %14 = math.tanh %13 : vector<16x128xf32>
    %15 = arith.truncf %14 : vector<16x128xf32> to vector<16x128xbf16>
    %c0_11 = arith.constant 0 : index
    %c0_12 = arith.constant 0 : index
    %16 = vector.load %arg6[%c0_11, %c0_12] : memref<128x128xbf16, #tpu.memory_space<vmem>>, vector<128x128xbf16>
    %c0_13 = arith.constant 0 : index
    %c0_14 = arith.constant 0 : index
    %17 = vector.load %arg7[%c0_13, %c0_14] : memref<1x128xf32, #tpu.memory_space<vmem>>, vector<1x128xf32>
    %cst_15 = arith.constant dense<0.000000e+00> : vector<16x128xf32>
    %18 = tpu.matmul %15, %16, %cst_15 {dimension_numbers = #tpu.dot_dimension_numbers<[1], [0], [0], [1], [0, 0, 1, 1], [], []>} : vector<16x128xbf16>, vector<128x128xbf16>, vector<16x128xf32> -> vector<16x128xf32>
    %19 = vector.broadcast %17 : vector<1x128xf32> to vector<16x128xf32>
    %20 = arith.addf %18, %19 : vector<16x128xf32>
    %c0_16 = arith.constant 0 : index
    %c0_17 = arith.constant 0 : index
    %21 = vector.load %arg8[%c0_16, %c0_17] : memref<16x128xf32, #tpu.memory_space<vmem>>, vector<16x128xf32>
    tpu.vector_store %arg8[%c0_16, %c0_17], %20 {strides = array<i32>} : memref<16x128xf32, #tpu.memory_space<vmem>>, vector<16x128xf32>,
    return
  }
  func.func @transform_0(%arg0: i32) -> (i32, i32) {
    %c0_i32 = arith.constant 0 : i32
    %c0_i32_0 = arith.constant 0 : i32
    return %arg0, %c0_i32 : i32, i32
  }
  func.func @transform_1(%arg0: i32) -> (i32, i32) {
    %c0_i32 = arith.constant 0 : i32
    %c0_i32_0 = arith.constant 0 : i32
    %c0_i32_1 = arith.constant 0 : i32
    return %c0_i32, %c0_i32_0 : i32, i32
  }
  func.func @transform_2(%arg0: i32) -> (i32, i32) {
    %c0_i32 = arith.constant 0 : i32
    %c0_i32_0 = arith.constant 0 : i32
    %c0_i32_1 = arith.constant 0 : i32
    return %c0_i32, %c0_i32_0 : i32, i32
  }
  func.func @transform_3(%arg0: i32) -> (i32, i32) {
    %c0_i32 = arith.constant 0 : i32
    %c0_i32_0 = arith.constant 0 : i32
    %c0_i32_1 = arith.constant 0 : i32
    return %c0_i32, %c0_i32_0 : i32, i32
  }
  func.func @transform_4(%arg0: i32) -> (i32, i32) {
    %c0_i32 = arith.constant 0 : i32
    %c0_i32_0 = arith.constant 0 : i32
    %c0_i32_1 = arith.constant 0 : i32
    return %c0_i32, %c0_i32_0 : i32, i32
  }
  func.func @transform_5(%arg0: i32) -> (i32, i32) {
    %c0_i32 = arith.constant 0 : i32
    %c0_i32_0 = arith.constant 0 : i32
    %c0_i32_1 = arith.constant 0 : i32
    return %c0_i32, %c0_i32_0 : i32, i32
  }
  func.func @transform_6(%arg0: i32) -> (i32, i32) {
    %c0_i32 = arith.constant 0 : i32
    %c0_i32_0 = arith.constant 0 : i32
    %c0_i32_1 = arith.constant 0 : i32
    return %c0_i32, %c0_i32_0 : i32, i32
  }
  func.func @transform_7(%arg0: i32) -> (i32, i32) {
    %c0_i32 = arith.constant 0 : i32
    %c0_i32_0 = arith.constant 0 : i32
    return %arg0, %c0_i32 : i32, i32
  }
}

module attributes {stable_mosaic.version = 11 : i64} {
  func.func @_ffnet_kernel(%arg0: i32, %arg1: memref<16x128xbf16, #tpu.memory_space<vmem>>, %arg2: memref<128x128xbf16, #tpu.memory_space<vmem>>, %arg3: memref<1x128xf32, #tpu.memory_space<vmem>>, %arg4: memref<128x128xbf16, #tpu.memory_space<vmem>>, %arg5: memref<1x128xf32, #tpu.memory_space<vmem>>, %arg6: memref<128x128xbf16, #tpu.memory_space<vmem>>, %arg7: memref<1x128xf32, #tpu.memory_space<vmem>>, %arg8: memref<16x128xf32, #tpu.memory_space<vmem>>) attributes {dimension_semantics = [#tpu.dimension_semantics<parallel>], iteration_bounds = array<i64: 1>, scalar_prefetch = 0 : i64, scratch_operands = 0 : i64, tpu.core_type = #tpu.core_type<tc>, window_params = [{transform_indices = @transform_0, window_bounds = array<i64: 16, 128>}, {pipeline_mode = #tpu.pipeline_mode<synchronous>, transform_indices = @transform_1, window_bounds = array<i64: 128, 128>}, {pipeline_mode = #tpu.pipeline_mode<synchronous>, transform_indices = @transform_2, window_bounds = array<i64: 1, 128>}, {pipeline_mode = #tpu.pipeline_mode<synchronous>, transform_indices = @transform_3, window_bounds = array<i64: 128, 128>}, {pipeline_mode = #tpu.pipeline_mode<synchronous>, transform_indices = @transform_4, window_bounds = array<i64: 1, 128>}, {pipeline_mode = #tpu.pipeline_mode<synchronous>, transform_indices = @transform_5, window_bounds = array<i64: 128, 128>}, {pipeline_mode = #tpu.pipeline_mode<synchronous>, transform_indices = @transform_6, window_bounds = array<i64: 1, 128>}, {transform_indices = @transform_7, window_bounds = array<i64: 16, 128>}]} {
    %c0 = arith.constant 0 : index
    %c0_0 = arith.constant 0 : index
    %0 = vector.load %arg1[%c0, %c0_0] : memref<16x128xbf16, #tpu.memory_space<vmem>>, vector<16x128xbf16>
    %c0_1 = arith.constant 0 : index
    %c0_2 = arith.constant 0 : index
    %1 = vector.load %arg2[%c0_1, %c0_2] : memref<128x128xbf16, #tpu.memory_space<vmem>>, vector<128x128xbf16>
    %c0_3 = arith.constant 0 : index
    %c0_4 = arith.constant 0 : index
    %2 = vector.load %arg3[%c0_3, %c0_4] : memref<1x128xf32, #tpu.memory_space<vmem>>, vector<1x128xf32>
    %cst = arith.constant dense<0.000000e+00> : vector<16x128xf32>
    %3 = tpu.matmul %0, %1, %cst {dimension_numbers = #tpu.dot_dimension_numbers<[1], [0], [0], [1], [0, 0, 1, 1], [], []>} : vector<16x128xbf16>, vector<128x128xbf16>, vector<16x128xf32> -> vector<16x128xf32>
    %4 = vector.broadcast %2 : vector<1x128xf32> to vector<16x128xf32>
    %5 = arith.addf %3, %4 : vector<16x128xf32>
    %cst_5 = arith.constant 0.000000e+00 : f32
    %6 = vector.broadcast %cst_5 : f32 to vector<16x128xf32>
    %7 = arith.maximumf %5, %6 : vector<16x128xf32>
    %8 = arith.truncf %7 : vector<16x128xf32> to vector<16x128xbf16>
    %c0_6 = arith.constant 0 : index
    %c0_7 = arith.constant 0 : index
    %9 = vector.load %arg4[%c0_6, %c0_7] : memref<128x128xbf16, #tpu.memory_space<vmem>>, vector<128x128xbf16>
    %c0_8 = arith.constant 0 : index
    %c0_9 = arith.constant 0 : index
    %10 = vector.load %arg5[%c0_8, %c0_9] : memref<1x128xf32, #tpu.memory_space<vmem>>, vector<1x128xf32>
    %cst_10 = arith.constant dense<0.000000e+00> : vector<16x128xf32>
    %11 = tpu.matmul %8, %9, %cst_10 {dimension_numbers = #tpu.dot_dimension_numbers<[1], [0], [0], [1], [0, 0, 1, 1], [], []>} : vector<16x128xbf16>, vector<128x128xbf16>, vector<16x128xf32> -> vector<16x128xf32>
    %12 = vector.broadcast %10 : vector<1x128xf32> to vector<16x128xf32>
    %13 = arith.addf %11, %12 : vector<16x128xf32>
    %14 = math.tanh %13 : vector<16x128xf32>
    %15 = arith.truncf %14 : vector<16x128xf32> to vector<16x128xbf16>
    %c0_11 = arith.constant 0 : index
    %c0_12 = arith.constant 0 : index
    %16 = vector.load %arg6[%c0_11, %c0_12] : memref<128x128xbf16, #tpu.memory_space<vmem>>, vector<128x128xbf16>
    %c0_13 = arith.constant 0 : index
    %c0_14 = arith.constant 0 : index
    %17 = vector.load %arg7[%c0_13, %c0_14] : memref<1x128xf32, #tpu.memory_space<vmem>>, vector<1x128xf32>
    %cst_15 = arith.constant dense<0.000000e+00> : vector<16x128xf32>
    %18 = tpu.matmul %15, %16, %cst_15 {dimension_numbers = #tpu.dot_dimension_numbers<[1], [0], [0], [1], [0, 0, 1, 1], [], []>} : vector<16x128xbf16>, vector<128x128xbf16>, vector<16x128xf32> -> vector<16x128xf32>
    %19 = vector.broadcast %17 : vector<1x128xf32> to vector<16x128xf32>
    %20 = arith.addf %18, %19 : vector<16x128xf32>
    %c0_16 = arith.constant 0 : index
    %c0_17 = arith.constant 0 : index
    %21 = vector.load %arg8[%c0_16, %c0_17] : memref<16x128xf32, #tpu.memory_space<vmem>>, vector<16x128xf32>
    tpu.vector_store %arg8[%c0_16, %c0_17], %20 {strides = array<i32>} : memref<16x128xf32, #tpu.memory_space<vmem>>, vector<16x128xf32>,
    return
  }
  func.func @transform_0(%arg0: i32) -> (i32, i32) {
    %c0_i32 = arith.constant 0 : i32
    %c0_i32_0 = arith.constant 0 : i32
    return %arg0, %c0_i32 : i32, i32
  }
  func.func @transform_1(%arg0: i32) -> (i32, i32) {
    %c0_i32 = arith.constant 0 : i32
    %c0_i32_0 = arith.constant 0 : i32
    %c0_i32_1 = arith.constant 0 : i32
    return %c0_i32, %c0_i32_0 : i32, i32
  }
  func.func @transform_2(%arg0: i32) -> (i32, i32) {
    %c0_i32 = arith.constant 0 : i32
    %c0_i32_0 = arith.constant 0 : i32
    %c0_i32_1 = arith.constant 0 : i32
    return %c0_i32, %c0_i32_0 : i32, i32
  }
  func.func @transform_3(%arg0: i32) -> (i32, i32) {
    %c0_i32 = arith.constant 0 : i32
    %c0_i32_0 = arith.constant 0 : i32
    %c0_i32_1 = arith.constant 0 : i32
    return %c0_i32, %c0_i32_0 : i32, i32
  }
  func.func @transform_4(%arg0: i32) -> (i32, i32) {
    %c0_i32 = arith.constant 0 : i32
    %c0_i32_0 = arith.constant 0 : i32
    %c0_i32_1 = arith.constant 0 : i32
    return %c0_i32, %c0_i32_0 : i32, i32
  }
  func.func @transform_5(%arg0: i32) -> (i32, i32) {
    %c0_i32 = arith.constant 0 : i32
    %c0_i32_0 = arith.constant 0 : i32
    %c0_i32_1 = arith.constant 0 : i32
    return %c0_i32, %c0_i32_0 : i32, i32
  }
  func.func @transform_6(%arg0: i32) -> (i32, i32) {
    %c0_i32 = arith.constant 0 : i32
    %c0_i32_0 = arith.constant 0 : i32
    %c0_i32_1 = arith.constant 0 : i32
    return %c0_i32, %c0_i32_0 : i32, i32
  }
  func.func @transform_7(%arg0: i32) -> (i32, i32) {
    %c0_i32 = arith.constant 0 : i32
    %c0_i32_0 = arith.constant 0 : i32
    return %arg0, %c0_i32 : i32, i32
  }
}

</mosaic_0001>

<bundles_post_ra>
// kernel: _ffnet_forward_jit.1
= control target key start
LH: loop header
LB: loop body
LE: loop exit
PB: predicated region body
PF: predicated region fallthrough
CT: control target
= control target key end

     0   :  { %12 = vsyncpa [#allocation3], 0  ;;  %s626_s0 = inlined_call_operand.vmem [shape: bf16[16,128], index: 0, kind: input, shape index: {}]   ;;  %s627_s1 = inlined_call_operand.hbm [shape: bf16[128,128], index: 1, kind: input, shape index: {}]   ;;  %s628_s2 = inlined_call_operand.vmem [shape: f32[1,128], index: 2, kind: input, shape index: {}]   ;;  %s629_s3 = inlined_call_operand.hbm [shape: bf16[128,128], index: 3, kind: input, shape index: {}]   ;;  %s630_s4 = inlined_call_operand.vmem [shape: f32[1,128], index: 4, kind: input, shape index: {}]   ;;  %s631_s5 = inlined_call_operand.hbm [shape: bf16[128,128], index: 5, kind: input, shape index: {}]   ;;  %s632_s6 = inlined_call_operand.vmem [shape: f32[1,128], index: 6, kind: input, shape index: {}]   ;;  %s633_s7 = inlined_call_operand.vmem [shape: f32[16,128], index: 7, kind: output, shape index: {}]  }
   0x1   :  { %13 = vsyncpa [#allocation5], 0  ;;  %s35_s26 = sshll.u32 %s629_s3, 4  ;;  %s554_s27 = smov [#allocation4]   ;;  %s36_s26 = int_to_ptr.hbm [resolvable:$true] %s35_s26 }
   0x2   :  { %s37_s28 = sshll.u32 %s554_s27, 4  ;;  %s20_s8 = sshll.u32 %s627_s1, 4  ;;  %s38_s28 = int_to_ptr.vmem [resolvable:$true] %s37_s28  ;;  %s21_s8 = int_to_ptr.hbm [resolvable:$true] %s20_s8 }
   0x3   :  { %s555_s9 = smov 64   ;;  %s556_s10 = smov 4  }
   0x4   :  { %43 = dma.hbm_to_vmem [thread:$0]  %s36_s26, 1024, %s38_s28, [#allocation5], %s555_s9, %s555_s9, %s556_s10  }
   0x5   :  { %s557_s11 = smov [#allocation2]   ;;  %s50_s15 = sshll.u32 %s631_s5, 4  ;;  %s51_s15 = int_to_ptr.hbm [resolvable:$true] %s50_s15 }
   0x6   :  { %s22_s12 = sshll.u32 %s557_s11, 4  ;;  %s558_s3 = smov [#allocation6]   ;;  %s23_s12 = int_to_ptr.vmem [resolvable:$true] %s22_s12 }
   0x7   :  { %28 = dma.hbm_to_vmem [thread:$0]  %s21_s8, 1024, %s23_s12, [#allocation3], %s555_s9, %s555_s9, %s556_s10  }
   0x8   :  { %s52_s16 = sshll.u32 %s558_s3, 4  ;;  %s53_s16 = int_to_ptr.vmem [resolvable:$true] %s52_s16 }
   0x9   :  { %58 = dma.hbm_to_vmem [thread:$0]  %s51_s15, 1024, %s53_s16, [#allocation5], %s555_s9, %s555_s9, %s556_s10  }
   0xa   :  { %550 = dma.done.wait [#allocation3], 1024  }
   0xb   :  { %551 = vsyncadd [#allocation3], 4294966272 }
   0xc   :  { %552 = dma.done.wait [#allocation5], 2048  }
   0xd   :  { %553 = vsyncadd [#allocation5], 4294965248  ;;  %v449_v0 = vld [vmem:[#allocation2 + $0x38] sm:$0xff]  ;;  %v448_v1 = vld [vmem:[#allocation2 + $0x30] sm:$0xff] }
   0xe   :  { %149 = vmatpush.bf16.msra.mxu0 %v449_v0  ;;  %v457_v2 = vld [vmem:[#allocation4 + $0x38] sm:$0xff]  ;;  %v456_v3 = vld [vmem:[#allocation4 + $0x30] sm:$0xff]  ;;  %v447_v4 = vld [vmem:[#allocation2 + $0x28] sm:$0xff] }
   0xf   :  { %234 = vmatpush.bf16.msra.mxu1 %v457_v2  ;;  %v455_v5 = vld [vmem:[#allocation4 + $0x28] sm:$0xff]  ;;  %v446_v6 = vld [vmem:[#allocation2 + $0x20] sm:$0xff]  ;;  %v445_v8 = vld [vmem:[#allocation2 + $0x18] sm:$0xff] }
  0x10   :  { %v454_v7 = vld [vmem:[#allocation4 + $0x20] sm:$0xff]  ;;  %v444_v9 = vld [vmem:[#allocation2 + $0x10] sm:$0xff]  ;;  %v443_v10 = vld [vmem:[#allocation2 + $0x8] sm:$0xff] }
  0x11   :  { %v442_v11 = vld [vmem:[#allocation2] sm:$0xff]  ;;  %v453_v13 = vld [vmem:[#allocation4 + $0x18] sm:$0xff]  ;;  %v452_v14 = vld [vmem:[#allocation4 + $0x10] sm:$0xff] }
  0x12   :  { %150 = vmatpush.bf16.msra.mxu0 %v448_v1  ;;  %v441_v12 = vld [vmem:[%s626_s0] sm:$0xff]  ;;  %v451_v15 = vld [vmem:[#allocation4 + $0x8] sm:$0xff]  ;;  %v465_v17 = vld [vmem:[#allocation6 + $0x38] sm:$0xff] }
  0x13   :  { %235 = vmatpush.bf16.msra.mxu1 %v456_v3  ;;  %v450_v16 = vld [vmem:[#allocation4] sm:$0xff]  ;;  %319 = vmatpush.bf16.msra.mxu2 %v465_v17  ;;  %v464_v18 = vld [vmem:[#allocation6 + $0x30] sm:$0xff]  ;;  %v463_v19 = vld [vmem:[#allocation6 + $0x28] sm:$0xff] }
  0x14   :  { %v471_v21 = vld [vmem:[%s628_s2] ss:$0 sm:$0xff]  ;;  %v461_v29 = vld [vmem:[#allocation6 + $0x18] sm:$0xff]  ;;  %v460_v30 = vld [vmem:[#allocation6 + $0x10] sm:$0xff] }
  0x15   :  { %v462_v28 = vld [vmem:[#allocation6 + $0x20] sm:$0xff]  ;;  %v459_v31 = vld [vmem:[#allocation6 + $0x8] sm:$0xff] }
  0x16   :  { %151 = vmatpush.bf16.msra.mxu0 %v447_v4  ;;  %v458_v32 = vld [vmem:[#allocation6] sm:$0xff] }
  0x17   :  { %236 = vmatpush.bf16.msra.mxu1 %v455_v5  ;;  %320 = vmatpush.bf16.msra.mxu2 %v464_v18  ;;  %v472_v34 = vld [vmem:[%s630_s4] ss:$0 sm:$0xff] }
  0x18   :  { %v473_v41 = vld [vmem:[%s632_s6] ss:$0 sm:$0xff] }
  0x1a   :  { %152 = vmatpush.bf16.msra.mxu0 %v446_v6 }
  0x1b   :  { %237 = vmatpush.bf16.msra.mxu1 %v454_v7  ;;  %321 = vmatpush.bf16.msra.mxu2 %v463_v19 }
  0x1e   :  { %153 = vmatpush.bf16.msra.mxu0 %v445_v8 }
  0x1f   :  { %238 = vmatpush.bf16.msra.mxu1 %v453_v13  ;;  %322 = vmatpush.bf16.msra.mxu2 %v462_v28 }
  0x22   :  { %154 = vmatpush.bf16.msra.mxu0 %v444_v9 }
  0x23   :  { %239 = vmatpush.bf16.msra.mxu1 %v452_v14  ;;  %323 = vmatpush.bf16.msra.mxu2 %v461_v29 }
  0x26   :  { %155 = vmatpush.bf16.msra.mxu0 %v443_v10 }
  0x27   :  { %240 = vmatpush.bf16.msra.mxu1 %v451_v15  ;;  %324 = vmatpush.bf16.msra.mxu2 %v460_v30 }
  0x2a   :  { %156 = vmatpush.bf16.msra.mxu0 %v442_v11 }
  0x2b   :  { %241 = vmatpush.bf16.msra.mxu1 %v450_v16  ;;  %325 = vmatpush.bf16.msra.mxu2 %v459_v31 }
  0x2d   :  { %157 = vmatmul.bf16.vlgmr.msra.gmra.mxu0 %v441_v12 }
  0x2f   :  { %326 = vmatpush.bf16.msra.mxu2 %v458_v32 }
  0xaa   :  { %v158_v20 = vpop.f32.mrf.mxu0 }
  0xab   :  { %v159_v22 = vadd.f32 %v471_v21, %v158_v20 }
  0xad   :  { %v163_v25 = vmax.f32 %v159_v22, 0.0 }
  0xb2   :  { %v160_v23 = vpop.f32.mrf.mxu0 }
  0xb3   :  { %v161_v24 = vadd.f32 %v471_v21, %v160_v23 }
  0xb5   :  { %v164_v26 = vmax.f32 %v161_v24, 0.0 }
  0xb7   :  { %v165_v27 = vpack.c.bf16 %v164_v26, %v163_v25 }
  0xb9   :  { %242 = vmatmul.bf16.vlgmr.msra.gmra.mxu1 %v165_v27 }
 0x136   :  { %v243_v33 = vpop.f32.mrf.mxu1 }
 0x137   :  { %v244_v35 = vadd.f32 %v472_v34, %v243_v33 }
 0x139   :  { %474 = vtanh.f32 %v244_v35 }
 0x13e   :  { %v245_v36 = vpop.f32.mrf.mxu1 }
 0x13f   :  { %v246_v37 = vadd.f32 %v472_v34, %v245_v36  ;;  %v475_v38 = vpop.eup %474 }
 0x141   :  { %476 = vtanh.f32 %v246_v37 }
 0x147   :  { %v477_v39 = vpop.eup %476 }
 0x148   :  { %v250_v40 = vpack.c.bf16 %v477_v39, %v475_v38 }
 0x14a   :  { %327 = vmatmul.bf16.vlgmr.msra.gmra.mxu2 %v250_v40 }
 0x1cd   :  { %v328_v42 = vpop.f32.mrf.mxu2 }
 0x1ce   :  { %v329_v43 = vadd.f32 %v473_v41, %v328_v42 }
 0x1d0   :  { %333 = vst [vmem:[%s633_s7] sm:$0xff] %v329_v43 }
 0x1d5   :  { %v330_v44 = vpop.f32.mrf.mxu2 }
 0x1d6   :  { %v331_v45 = vadd.f32 %v473_v41, %v330_v44 }
 0x1d8   :  { %334 = vst [vmem:[%s633_s7 + $0x8] sm:$0xff] %v331_v45 }
 0x1d9   :  { %339 = vsyncpa [#allocation3], 1 }
 0x1da   :  { %340 = vsyncpa [#allocation5], 1 }

// kernel: _ffnet_forward_jit.1
= control target key start
LH: loop header
LB: loop body
LE: loop exit
PB: predicated region body
PF: predicated region fallthrough
CT: control target
= control target key end

     0   :  { %12 = vsyncpa [#allocation3], 0  ;;  %s626_s0 = inlined_call_operand.vmem [shape: bf16[16,128], index: 0, kind: input, shape index: {}]   ;;  %s627_s1 = inlined_call_operand.hbm [shape: bf16[128,128], index: 1, kind: input, shape index: {}]   ;;  %s628_s2 = inlined_call_operand.vmem [shape: f32[1,128], index: 2, kind: input, shape index: {}]   ;;  %s629_s3 = inlined_call_operand.hbm [shape: bf16[128,128], index: 3, kind: input, shape index: {}]   ;;  %s630_s4 = inlined_call_operand.vmem [shape: f32[1,128], index: 4, kind: input, shape index: {}]   ;;  %s631_s5 = inlined_call_operand.hbm [shape: bf16[128,128], index: 5, kind: input, shape index: {}]   ;;  %s632_s6 = inlined_call_operand.vmem [shape: f32[1,128], index: 6, kind: input, shape index: {}]   ;;  %s633_s7 = inlined_call_operand.vmem [shape: f32[16,128], index: 7, kind: output, shape index: {}]  }
   0x1   :  { %13 = vsyncpa [#allocation5], 0  ;;  %s35_s26 = sshll.u32 %s629_s3, 4  ;;  %s554_s27 = smov [#allocation4]   ;;  %s36_s26 = int_to_ptr.hbm [resolvable:$true] %s35_s26 }
   0x2   :  { %s37_s28 = sshll.u32 %s554_s27, 4  ;;  %s20_s8 = sshll.u32 %s627_s1, 4  ;;  %s38_s28 = int_to_ptr.vmem [resolvable:$true] %s37_s28  ;;  %s21_s8 = int_to_ptr.hbm [resolvable:$true] %s20_s8 }
   0x3   :  { %s555_s9 = smov 64   ;;  %s556_s10 = smov 4  }
   0x4   :  { %43 = dma.hbm_to_vmem [thread:$0]  %s36_s26, 1024, %s38_s28, [#allocation5], %s555_s9, %s555_s9, %s556_s10  }
   0x5   :  { %s557_s11 = smov [#allocation2]   ;;  %s50_s15 = sshll.u32 %s631_s5, 4  ;;  %s51_s15 = int_to_ptr.hbm [resolvable:$true] %s50_s15 }
   0x6   :  { %s22_s12 = sshll.u32 %s557_s11, 4  ;;  %s558_s3 = smov [#allocation6]   ;;  %s23_s12 = int_to_ptr.vmem [resolvable:$true] %s22_s12 }
   0x7   :  { %28 = dma.hbm_to_vmem [thread:$0]  %s21_s8, 1024, %s23_s12, [#allocation3], %s555_s9, %s555_s9, %s556_s10  }
   0x8   :  { %s52_s16 = sshll.u32 %s558_s3, 4  ;;  %s53_s16 = int_to_ptr.vmem [resolvable:$true] %s52_s16 }
   0x9   :  { %58 = dma.hbm_to_vmem [thread:$0]  %s51_s15, 1024, %s53_s16, [#allocation5], %s555_s9, %s555_s9, %s556_s10  }
   0xa   :  { %550 = dma.done.wait [#allocation3], 1024  }
   0xb   :  { %551 = vsyncadd [#allocation3], 4294966272 }
   0xc   :  { %552 = dma.done.wait [#allocation5], 2048  }
   0xd   :  { %553 = vsyncadd [#allocation5], 4294965248  ;;  %v449_v0 = vld [vmem:[#allocation2 + $0x38] sm:$0xff]  ;;  %v448_v1 = vld [vmem:[#allocation2 + $0x30] sm:$0xff] }
   0xe   :  { %149 = vmatpush.bf16.msra.mxu0 %v449_v0  ;;  %v457_v2 = vld [vmem:[#allocation4 + $0x38] sm:$0xff]  ;;  %v456_v3 = vld [vmem:[#allocation4 + $0x30] sm:$0xff]  ;;  %v447_v4 = vld [vmem:[#allocation2 + $0x28] sm:$0xff] }
   0xf   :  { %234 = vmatpush.bf16.msra.mxu1 %v457_v2  ;;  %v455_v5 = vld [vmem:[#allocation4 + $0x28] sm:$0xff]  ;;  %v446_v6 = vld [vmem:[#allocation2 + $0x20] sm:$0xff]  ;;  %v445_v8 = vld [vmem:[#allocation2 + $0x18] sm:$0xff] }
  0x10   :  { %v454_v7 = vld [vmem:[#allocation4 + $0x20] sm:$0xff]  ;;  %v444_v9 = vld [vmem:[#allocation2 + $0x10] sm:$0xff]  ;;  %v443_v10 = vld [vmem:[#allocation2 + $0x8] sm:$0xff] }
  0x11   :  { %v442_v11 = vld [vmem:[#allocation2] sm:$0xff]  ;;  %v453_v13 = vld [vmem:[#allocation4 + $0x18] sm:$0xff]  ;;  %v452_v14 = vld [vmem:[#allocation4 + $0x10] sm:$0xff] }
  0x12   :  { %150 = vmatpush.bf16.msra.mxu0 %v448_v1  ;;  %v441_v12 = vld [vmem:[%s626_s0] sm:$0xff]  ;;  %v451_v15 = vld [vmem:[#allocation4 + $0x8] sm:$0xff]  ;;  %v465_v17 = vld [vmem:[#allocation6 + $0x38] sm:$0xff] }
  0x13   :  { %235 = vmatpush.bf16.msra.mxu1 %v456_v3  ;;  %v450_v16 = vld [vmem:[#allocation4] sm:$0xff]  ;;  %319 = vmatpush.bf16.msra.mxu2 %v465_v17  ;;  %v464_v18 = vld [vmem:[#allocation6 + $0x30] sm:$0xff]  ;;  %v463_v19 = vld [vmem:[#allocation6 + $0x28] sm:$0xff] }
  0x14   :  { %v471_v21 = vld [vmem:[%s628_s2] ss:$0 sm:$0xff]  ;;  %v461_v29 = vld [vmem:[#allocation6 + $0x18] sm:$0xff]  ;;  %v460_v30 = vld [vmem:[#allocation6 + $0x10] sm:$0xff] }
  0x15   :  { %v462_v28 = vld [vmem:[#allocation6 + $0x20] sm:$0xff]  ;;  %v459_v31 = vld [vmem:[#allocation6 + $0x8] sm:$0xff] }
  0x16   :  { %151 = vmatpush.bf16.msra.mxu0 %v447_v4  ;;  %v458_v32 = vld [vmem:[#allocation6] sm:$0xff] }
  0x17   :  { %236 = vmatpush.bf16.msra.mxu1 %v455_v5  ;;  %320 = vmatpush.bf16.msra.mxu2 %v464_v18  ;;  %v472_v34 = vld [vmem:[%s630_s4] ss:$0 sm:$0xff] }
  0x18   :  { %v473_v41 = vld [vmem:[%s632_s6] ss:$0 sm:$0xff] }
  0x1a   :  { %152 = vmatpush.bf16.msra.mxu0 %v446_v6 }
  0x1b   :  { %237 = vmatpush.bf16.msra.mxu1 %v454_v7  ;;  %321 = vmatpush.bf16.msra.mxu2 %v463_v19 }
  0x1e   :  { %153 = vmatpush.bf16.msra.mxu0 %v445_v8 }
  0x1f   :  { %238 = vmatpush.bf16.msra.mxu1 %v453_v13  ;;  %322 = vmatpush.bf16.msra.mxu2 %v462_v28 }
  0x22   :  { %154 = vmatpush.bf16.msra.mxu0 %v444_v9 }
  0x23   :  { %239 = vmatpush.bf16.msra.mxu1 %v452_v14  ;;  %323 = vmatpush.bf16.msra.mxu2 %v461_v29 }
  0x26   :  { %155 = vmatpush.bf16.msra.mxu0 %v443_v10 }
  0x27   :  { %240 = vmatpush.bf16.msra.mxu1 %v451_v15  ;;  %324 = vmatpush.bf16.msra.mxu2 %v460_v30 }
  0x2a   :  { %156 = vmatpush.bf16.msra.mxu0 %v442_v11 }
  0x2b   :  { %241 = vmatpush.bf16.msra.mxu1 %v450_v16  ;;  %325 = vmatpush.bf16.msra.mxu2 %v459_v31 }
  0x2d   :  { %157 = vmatmul.bf16.vlgmr.msra.gmra.mxu0 %v441_v12 }
  0x2f   :  { %326 = vmatpush.bf16.msra.mxu2 %v458_v32 }
  0xaa   :  { %v158_v20 = vpop.f32.mrf.mxu0 }
  0xab   :  { %v159_v22 = vadd.f32 %v471_v21, %v158_v20 }
  0xad   :  { %v163_v25 = vmax.f32 %v159_v22, 0.0 }
  0xb2   :  { %v160_v23 = vpop.f32.mrf.mxu0 }
  0xb3   :  { %v161_v24 = vadd.f32 %v471_v21, %v160_v23 }
  0xb5   :  { %v164_v26 = vmax.f32 %v161_v24, 0.0 }
  0xb7   :  { %v165_v27 = vpack.c.bf16 %v164_v26, %v163_v25 }
  0xb9   :  { %242 = vmatmul.bf16.vlgmr.msra.gmra.mxu1 %v165_v27 }
 0x136   :  { %v243_v33 = vpop.f32.mrf.mxu1 }
 0x137   :  { %v244_v35 = vadd.f32 %v472_v34, %v243_v33 }
 0x139   :  { %474 = vtanh.f32 %v244_v35 }
 0x13e   :  { %v245_v36 = vpop.f32.mrf.mxu1 }
 0x13f   :  { %v246_v37 = vadd.f32 %v472_v34, %v245_v36  ;;  %v475_v38 = vpop.eup %474 }
 0x141   :  { %476 = vtanh.f32 %v246_v37 }
 0x147   :  { %v477_v39 = vpop.eup %476 }
 0x148   :  { %v250_v40 = vpack.c.bf16 %v477_v39, %v475_v38 }
 0x14a   :  { %327 = vmatmul.bf16.vlgmr.msra.gmra.mxu2 %v250_v40 }
 0x1cd   :  { %v328_v42 = vpop.f32.mrf.mxu2 }
 0x1ce   :  { %v329_v43 = vadd.f32 %v473_v41, %v328_v42 }
 0x1d0   :  { %333 = vst [vmem:[%s633_s7] sm:$0xff] %v329_v43 }
 0x1d5   :  { %v330_v44 = vpop.f32.mrf.mxu2 }
 0x1d6   :  { %v331_v45 = vadd.f32 %v473_v41, %v330_v44 }
 0x1d8   :  { %334 = vst [vmem:[%s633_s7 + $0x8] sm:$0xff] %v331_v45 }
 0x1d9   :  { %339 = vsyncpa [#allocation3], 1 }
 0x1da   :  { %340 = vsyncpa [#allocation5], 1 }

</bundles_post_ra>
